<compile_context>
chip_gen: v5e
topology: v5e:2x2
jax: 0.10.0
libtpu: 0.0.40
codegen_flags: <defaults>
</compile_context>

<pallas_src>
import jax
import jax.numpy as jnp
from jax.experimental import pallas as pl
from jax.experimental.pallas import tpu as pltpu

_LANE = 128


def _round_up(a: int, b: int) -> int:
    return (a + b - 1) // b * b


def _normalize_kernel(mean_ref, inv_std_ref, x_ref, o_ref):
    # x_ref: (R, 128) tile of the flattened tensor.
    # mean_ref / inv_std_ref: (R, 1) f32, one scalar per 128-lane row
    # (each row belongs to exactly one (n, c) plane); broadcast over lanes.
    x = x_ref[...].astype(jnp.float32)
    o_ref[...] = ((x - mean_ref[...]) * inv_std_ref[...]).astype(o_ref.dtype)


def normalize(x: jax.Array, mean, std) -> jax.Array:
    """(x - mean) / std with mean/std broadcast over (1, 3, 1, 1), NCHW input."""
    assert x.ndim == 4, "input must be 4-D (N, C, H, W)"
    N, C, H, W = x.shape
    assert C == 3, "Normalize is defined for 3 channels"
    assert jnp.issubdtype(x.dtype, jnp.floating), "Normalize expects a float input"

    mean_f = jnp.asarray(mean, jnp.float32).reshape(C)
    inv_std_f = 1.0 / jnp.asarray(std, jnp.float32).reshape(C)

    HW = H * W
    NC = N * C
    itemsize = jnp.dtype(x.dtype).itemsize

    # Tiny planes: lane padding would dominate and pallas_call overhead beats the
    # work — let XLA's fused broadcast handle it.
    if HW < _LANE:
        return ((x - mean_f.reshape(1, C, 1, 1)) * inv_std_f.reshape(1, C, 1, 1)).astype(x.dtype)

    # Flatten to (rows, 128).  Pad each plane only up to a multiple of 128 lanes
    # (< 128 wasted elements per (n, c) plane; usually zero and the reshapes are free).
    hw_pad = _round_up(HW, _LANE)
    if hw_pad != HW:
        x2 = jnp.pad(x.reshape(NC, HW), ((0, 0), (0, hw_pad - HW)))
    else:
        x2 = x.reshape(NC, HW)
    rows_per_plane = hw_pad // _LANE
    total_rows = NC * rows_per_plane
    x3 = x2.reshape(total_rows, _LANE)

    # Per-row scale operands (tiny: 4 bytes per 128*itemsize bytes of payload).
    mean_rows = jnp.repeat(jnp.tile(mean_f, N), rows_per_plane).reshape(total_rows, 1)
    inv_std_rows = jnp.repeat(jnp.tile(inv_std_f, N), rows_per_plane).reshape(total_rows, 1)

    # Block rows: ~4 MiB per x buffer; dtype-aware minimum sublane count so
    # packed dtypes (bf16 / fp8) still fill whole vregs and store unmasked.
    sub_min = max(8, 32 // itemsize)                       # 8 f32, 16 bf16, 32 fp8
    target_rows = max(sub_min, (4 * 1024 * 1024) // (_LANE * itemsize))
    target_rows = (target_rows // sub_min) * sub_min
    if total_rows <= target_rows:
        blk_rows = total_rows        # single full-array block (no alignment req.)
    else:
        blk_rows = target_rows       # last grid block is masked if not divisible

    grid = (pl.cdiv(total_rows, blk_rows),)
    x_spec = pl.BlockSpec((blk_rows, _LANE), lambda i: (i, 0))
    s_spec = pl.BlockSpec((blk_rows, 1), lambda i: (i, 0))

    out = pl.pallas_call(
        _normalize_kernel,
        out_shape=jax.ShapeDtypeStruct((total_rows, _LANE), x.dtype),
        grid=grid,
        in_specs=[s_spec, s_spec, x_spec],
        out_specs=x_spec,
        compiler_params=pltpu.CompilerParams(
            dimension_semantics=("parallel",),
            vmem_limit_bytes=32 * 1024 * 1024,
        ),
        cost_estimate=pl.CostEstimate(
            flops=2 * total_rows * _LANE,
            transcendentals=0,
            bytes_accessed=2 * total_rows * _LANE * itemsize + 4 * total_rows * 4,
        ),
    )(mean_rows, inv_std_rows, x3)

    out2 = out.reshape(NC, hw_pad)
    if hw_pad != HW:
        out2 = out2[:, :HW]
    return out2.reshape(N, C, H, W)


def _reference(x, mean, std):
    m = jnp.asarray(mean, jnp.float32).reshape(1, 3, 1, 1)
    s = jnp.asarray(std, jnp.float32).reshape(1, 3, 1, 1)
    return ((x.astype(jnp.float32) - m) / s).astype(x.dtype)


if __name__ == "__main__":
    key = jax.random.PRNGKey(0)

    # Deterministic "ImageNet-style" buffers (synthetic, defined in-script).
    mean = [0.485, 0.456, 0.406]
    std = [0.229, 0.224, 0.225]

    # Primary small demo shape (N, C, H, W) = (2, 3, 16, 16): HW is a multiple
    # of 128, so the Pallas path runs with zero padding / zero extra copies.
    k1, k2 = jax.random.split(key)
    x = jax.random.uniform(k1, (2, 3, 16, 16), dtype=jnp.float32)
    out = jax.block_until_ready(normalize(x, mean, std))
    ref = _reference(x, mean, std)
    assert out.shape == x.shape and out.dtype == x.dtype
    assert jnp.allclose(out, ref, atol=1e-5, rtol=1e-5)

    # Secondary small shape with HW not a multiple of 128 to exercise the
    # bounded (<128 elems/plane) padding + slice path.
    x_odd = jax.random.uniform(k2, (2, 3, 17, 19), dtype=jnp.float32)
    out_odd = jax.block_until_ready(normalize(x_odd, mean, std))
    ref_odd = _reference(x_odd, mean, std)
    assert out_odd.shape == x_odd.shape and out_odd.dtype == x_odd.dtype
    assert jnp.allclose(out_odd, ref_odd, atol=1e-5, rtol=1e-5)

    print("KERNEL_OK")
</pallas_src>

<mosaic_0001>
module attributes {stable_mosaic.version = 11 : i64} {
  func.func @_normalize_kernel(%arg0: i32, %arg1: memref<12x1xf32, #tpu.memory_space<vmem>>, %arg2: memref<12x1xf32, #tpu.memory_space<vmem>>, %arg3: memref<12x128xf32, #tpu.memory_space<vmem>>, %arg4: memref<12x128xf32, #tpu.memory_space<vmem>>) attributes {dimension_semantics = [#tpu.dimension_semantics<parallel>], iteration_bounds = array<i64: 1>, scalar_prefetch = 0 : i64, scratch_operands = 0 : i64, tpu.core_type = #tpu.core_type<tc>, window_params = [{transform_indices = @transform_0, window_bounds = array<i64: 12, 1>}, {transform_indices = @transform_1, window_bounds = array<i64: 12, 1>}, {transform_indices = @transform_2, window_bounds = array<i64: 12, 128>}, {transform_indices = @transform_3, window_bounds = array<i64: 12, 128>}]} {
    %c0 = arith.constant 0 : index
    %c0_0 = arith.constant 0 : index
    %0 = vector.load %arg3[%c0, %c0_0] : memref<12x128xf32, #tpu.memory_space<vmem>>, vector<12x128xf32>
    %c0_1 = arith.constant 0 : index
    %c0_2 = arith.constant 0 : index
    %1 = vector.load %arg1[%c0_1, %c0_2] : memref<12x1xf32, #tpu.memory_space<vmem>>, vector<12x1xf32>
    %2 = vector.broadcast %1 : vector<12x1xf32> to vector<12x128xf32>
    %3 = arith.subf %0, %2 : vector<12x128xf32>
    %c0_3 = arith.constant 0 : index
    %c0_4 = arith.constant 0 : index
    %4 = vector.load %arg2[%c0_3, %c0_4] : memref<12x1xf32, #tpu.memory_space<vmem>>, vector<12x1xf32>
    %5 = vector.broadcast %4 : vector<12x1xf32> to vector<12x128xf32>
    %6 = arith.mulf %3, %5 : vector<12x128xf32>
    %c0_5 = arith.constant 0 : index
    %c0_6 = arith.constant 0 : index
    %7 = vector.load %arg4[%c0_5, %c0_6] : memref<12x128xf32, #tpu.memory_space<vmem>>, vector<12x128xf32>
    tpu.vector_store %arg4[%c0_5, %c0_6], %6 {strides = array<i32>} : memref<12x128xf32, #tpu.memory_space<vmem>>, vector<12x128xf32>,
    return
  }
  func.func @transform_0(%arg0: i32) -> (i32, i32) {
    %c0_i32 = arith.constant 0 : i32
    %c0_i32_0 = arith.constant 0 : i32
    return %arg0, %c0_i32 : i32, i32
  }
  func.func @transform_1(%arg0: i32) -> (i32, i32) {
    %c0_i32 = arith.constant 0 : i32
    %c0_i32_0 = arith.constant 0 : i32
    return %arg0, %c0_i32 : i32, i32
  }
  func.func @transform_2(%arg0: i32) -> (i32, i32) {
    %c0_i32 = arith.constant 0 : i32
    %c0_i32_0 = arith.constant 0 : i32
    return %arg0, %c0_i32 : i32, i32
  }
  func.func @transform_3(%arg0: i32) -> (i32, i32) {
    %c0_i32 = arith.constant 0 : i32
    %c0_i32_0 = arith.constant 0 : i32
    return %arg0, %c0_i32 : i32, i32
  }
}

</mosaic_0001>

<bundles_post_ra>
// kernel: tpu_custom_call.1
= control target key start
LH: loop header
LB: loop body
LE: loop exit
PB: predicated region body
PF: predicated region fallthrough
CT: control target
= control target key end

     0   :  { %v97_v2 = vmov 0   ;;  %s142_s0 = inlined_call_operand.vmem [shape: f32[12,1], index: 0, kind: input, shape index: {}]   ;;  %s143_s1 = inlined_call_operand.vmem [shape: f32[12,1], index: 1, kind: input, shape index: {}]   ;;  %s144_s2 = inlined_call_operand.vmem [shape: f32[12,128], index: 2, kind: input, shape index: {}]   ;;  %s145_s3 = inlined_call_operand.hbm [shape: f32[12,128], index: 3, kind: output, shape index: {}]  }
   0x1   :  { %v31_v0 = vld [vmem:[%s143_s1] sm:$0xff]  ;;  %70 = vset.pattern.permute.xlu1 %v97_v2  ;;  %69 = vset.pattern.permute.xlu0 %v97_v2 }
   0x2   :  { %v17_v1 = vld [vmem:[%s142_s0] sm:$0xff] }
   0x3   :  { %8 = vsyncpa [#allocation3], 0  ;;  %35 = vperm.xlu1 %70, %v31_v0   ;;  %21 = vperm.xlu0 %69, %v17_v1   ;;  %v32_v3 = vld [vmem:[%s143_s1 + $0x8] sm:$0xf]  ;;  %v15_v5 = vld [vmem:[%s144_s2] sm:$0xff]  ;;  %s98_s1 = smov [#allocation2]  }
   0x4   :  { %v18_v4 = vld [vmem:[%s142_s0 + $0x8] sm:$0xf]  ;;  %s51_s24 = sshll.u32 %s98_s1, 4  ;;  %s53_s0 = sshll.u32 %s145_s3, 4  ;;  %s52_s24 = int_to_ptr.vmem [resolvable:$true] %s51_s24  ;;  %s54_s0 = int_to_ptr.hbm [resolvable:$true] %s53_s0 }
   0x5   :  { %v16_v10 = vld [vmem:[%s144_s2 + $0x8] sm:$0xf]  ;;  %s99_s27 = smov 128   ;;  %s100_s28 = smov 8  }
   0xb   :  { %40 = vperm.xlu1 %70, %v32_v3   ;;  %26 = vperm.xlu0 %69, %v18_v4  }
  0x75   :  { %v36_v6 = vpop.permute.xlu1 %35  ;;  %v22_v7 = vpop.permute.xlu0 %21 }
  0x76   :  { %v29_v8 = vsub.f32 %v15_v5, %v22_v7 }
  0x78   :  { %v43_v9 = vmul.f32 %v36_v6, %v29_v8 }
  0x7a   :  { %45 = vst [vmem:[#allocation2] sm:$0xff] %v43_v9 }
  0x7d   :  { %v27_v11 = vpop.permute.xlu0 %26  ;;  %v41_v13 = vpop.permute.xlu1 %40 }
  0x7e   :  { %v30_v12 = vsub.f32 %v16_v10, %v27_v11 }
  0x80   :  { %v44_v14 = vmul.f32 %v41_v13, %v30_v12 }
  0x82   :  { %46 = vst [vmem:[#allocation2 + $0x8] sm:$0xf] %v44_v14 }
  0x83   :  { %59 = dma.vmem_to_hbm [thread:$0]  %s52_s24, 256, %s54_s0, [#allocation3], %s99_s27, %s99_s27, %s100_s28  }
  0x84   :  { %95 = dma.done.wait [#allocation3], 256  }
  0x85   :  { %96 = vsyncadd [#allocation3], 4294967040 }
  0x86   :  { %64 = vsyncpa [#allocation3], 1 }

</bundles_post_ra>
